<compile_context>
chip_gen: v5e
topology: v5e:2x2
jax: 0.10.0
libtpu: 0.0.40
codegen_flags: <defaults>
</compile_context>

<pallas_src>
import functools

import jax
import jax.numpy as jnp
import numpy as np
from jax.experimental import pallas as pl
from jax.experimental.pallas import tpu as pltpu


# Flattened output spatial rows (H_tile * W) processed per grid step.
MAX_TILE_ROWS = 512
_VMEM_LIMIT = 48 * 1024 * 1024  # leave headroom under v7x's 64 MiB physical VMEM


def _pick_th(H, W):
    """Rows of output H covered per grid step.

    TH must divide H and be even (2x2 pool).  When more than one tile is used
    TH must be a multiple of 8 so the dynamic row offset into the packed-bf16
    input stays (16,128)-tile aligned.
    """
    cands = [H] + [t for t in range(8, H, 8) if H % t == 0]
    ok = [t for t in cands if t * W <= MAX_TILE_ROWS]
    return max(ok) if ok else min(cands)


def _pool_matrix(TH, W):
    """Selection/average matrix: (TH/2 * W/2, TH*(W+2)) with 0.25 at the 4
    positions of each 2x2 window (garbage columns w in {W, W+1} get weight 0)."""
    Wp = W + 2
    P = (TH // 2) * (W // 2)
    S = np.zeros((P, TH * Wp), np.float32)
    for i in range(TH // 2):
        for j in range(W // 2):
            for dh in range(2):
                for dw in range(2):
                    S[i * (W // 2) + j, (2 * i + dh) * Wp + (2 * j + dw)] = 0.25
    return jnp.asarray(S, jnp.bfloat16)


# ----------------------------------------------------------------------------
# Kernel 1: 3x3 conv (9 in-kernel shifted-window matmuls) + BN affine + ReLU,
#           optionally fused with the 2x2 average pool (as a selection matmul).
# ----------------------------------------------------------------------------
def _conv9_kernel(x_ref, w_ref, s_ref, b_ref, *rest, TH, W, do_pool):
    # x_ref: (1, (H+3)*(W+2), Cin) bf16  zero-padded activation, resident per b
    # w_ref: (9, Cin, Cout) bf16         3x3 kernel flattened over taps
    # s_ref/b_ref: (1, Cout) f32         folded BN scale / bias
    # if do_pool: S_ref (P, TH*(W+2)) bf16 pooling matrix, o_ref (1, P, Cout)
    # else:       o_ref (1, TH*(W+2), Cout)   ("wide" layout, 2 junk cols/row)
    if do_pool:
        S_ref, o_ref = rest
    else:
        (o_ref,) = rest

    Wp = W + 2
    N = TH * Wp                      # accumulator rows for this tile
    L = (TH + 2) * Wp + 2            # slab rows needed (incl. 3x3 halo)

    t = pl.program_id(1)
    start = pl.multiple_of(t * N, 16)          # (16,128)-tile aligned for bf16

    # Load the slab once; upcast to f32 so the 9 odd-offset row slices below
    # stay on the well-supported 32-bit relayout path (bf16<->f32 is exact).
    slab = x_ref[0, pl.ds(start, L), :].astype(jnp.float32)   # (L, Cin)

    acc = None
    for k in range(9):
        kh, kw = k // 3, k % 3
        off = kh * Wp + kw
        lhs = slab[off:off + N, :].astype(jnp.bfloat16)        # (N, Cin)
        d = jnp.dot(lhs, w_ref[k], preferred_element_type=jnp.float32)
        acc = d if acc is None else acc + d                    # (N, Cout) f32

    y = jnp.maximum(acc * s_ref[...] + b_ref[...], 0.0)        # BN + ReLU, f32

    if do_pool:
        pooled = jnp.dot(S_ref[...], y.astype(jnp.bfloat16),
                         preferred_element_type=jnp.float32)   # (P, Cout)
        o_ref[0, :, :] = pooled.astype(o_ref.dtype)
    else:
        o_ref[0, :, :] = y.astype(o_ref.dtype)


def conv3x3_bn_relu(x, w, scale, bias, *, pool):
    """x: (B, H, W, Cin) bf16; w: (3,3,Cin,Cout) f32; scale/bias: (Cout,) f32.

    Returns (B, H/2, W/2, Cout) bf16 if pool else (B, H, W, Cout) bf16."""
    B, H, W, Cin = x.shape
    Cout = w.shape[-1]
    assert H % 2 == 0 and W % 2 == 0
    TH = _pick_th(H, W)
    n_t = H // TH
    Wp = W + 2

    # Zero-pad (1,2) on H and (1,1) on W, then flatten spatial rows.  The extra
    # bottom row keeps every in-kernel slab slice in bounds.
    xp = jnp.pad(x, ((0, 0), (1, 2), (1, 1), (0, 0)))
    xflat = xp.reshape(B, (H + 3) * Wp, Cin)
    w9 = w.reshape(9, Cin, Cout).astype(jnp.bfloat16)
    s2 = scale.reshape(1, Cout).astype(jnp.float32)
    b2 = bias.reshape(1, Cout).astype(jnp.float32)

    in_specs = [
        pl.BlockSpec((1, (H + 3) * Wp, Cin), lambda b, t: (b, 0, 0)),  # resident
        pl.BlockSpec((9, Cin, Cout), lambda b, t: (0, 0, 0)),
        pl.BlockSpec((1, Cout), lambda b, t: (0, 0)),
        pl.BlockSpec((1, Cout), lambda b, t: (0, 0)),
    ]
    args = [xflat, w9, s2, b2]

    if pool:
        P = (TH // 2) * (W // 2)
        in_specs.append(pl.BlockSpec((P, TH * Wp), lambda b, t: (0, 0)))
        args.append(_pool_matrix(TH, W))
        out_shape = jax.ShapeDtypeStruct((B, (H // 2) * (W // 2), Cout),
                                         jnp.bfloat16)
        out_spec = pl.BlockSpec((1, P, Cout), lambda b, t: (b, t, 0))
    else:
        out_shape = jax.ShapeDtypeStruct((B, H * Wp, Cout), jnp.bfloat16)
        out_spec = pl.BlockSpec((1, TH * Wp, Cout), lambda b, t: (b, t, 0))

    out = pl.pallas_call(
        functools.partial(_conv9_kernel, TH=TH, W=W, do_pool=pool),
        out_shape=out_shape,
        grid_spec=pltpu.PrefetchScalarGridSpec(
            num_scalar_prefetch=0,
            grid=(B, n_t),
            in_specs=in_specs,
            out_specs=out_spec,
        ),
        compiler_params=pltpu.CompilerParams(
            dimension_semantics=("parallel", "parallel"),
            vmem_limit_bytes=_VMEM_LIMIT,
        ),
    )(*args)

    if pool:
        return out.reshape(B, H // 2, W // 2, Cout)
    # Drop the two junk columns of the "wide" layout (fuses with the next pad).
    return out.reshape(B, H, Wp, Cout)[:, :, :W, :]


# ----------------------------------------------------------------------------
# Kernel 2: first conv (Cin=3) -> taps folded to one K=27 matmul + BN + ReLU
# ----------------------------------------------------------------------------
def _conv27_kernel(p_ref, w_ref, s_ref, b_ref, o_ref):
    acc = jnp.dot(p_ref[0], w_ref[...], preferred_element_type=jnp.float32)
    o_ref[0, :, :] = jnp.maximum(acc * s_ref[...] + b_ref[...], 0.0
                                 ).astype(o_ref.dtype)


def conv3x3_first(x, w, scale, bias):
    """x: (B, H, W, 3) f32; w: (3,3,3,Cout) f32 -> (B, H, W, Cout) bf16."""
    B, H, W, Cin = x.shape
    Cout = w.shape[-1]
    xb = x.astype(jnp.bfloat16)
    xp = jnp.pad(xb, ((0, 0), (1, 1), (1, 1), (0, 0)))
    # (B, H*W, 27) patches: cheap because Cin=3 (tiny vs the 128-ch activations)
    patches = jnp.concatenate(
        [xp[:, kh:kh + H, kw:kw + W, :] for kh in range(3) for kw in range(3)],
        axis=-1,
    ).reshape(B, H * W, 9 * Cin)
    w27 = w.reshape(9 * Cin, Cout).astype(jnp.bfloat16)

    TH = _pick_th(H, W)
    n_t = H // TH
    R = TH * W

    out = pl.pallas_call(
        _conv27_kernel,
        out_shape=jax.ShapeDtypeStruct((B, H * W, Cout), jnp.bfloat16),
        grid_spec=pltpu.PrefetchScalarGridSpec(
            num_scalar_prefetch=0,
            grid=(B, n_t),
            in_specs=[
                pl.BlockSpec((1, R, 9 * Cin), lambda b, t: (b, t, 0)),
                pl.BlockSpec((9 * Cin, Cout), lambda b, t: (0, 0)),
                pl.BlockSpec((1, Cout), lambda b, t: (0, 0)),
                pl.BlockSpec((1, Cout), lambda b, t: (0, 0)),
            ],
            out_specs=pl.BlockSpec((1, R, Cout), lambda b, t: (b, t, 0)),
        ),
        compiler_params=pltpu.CompilerParams(
            dimension_semantics=("parallel", "parallel"),
            vmem_limit_bytes=_VMEM_LIMIT,
        ),
    )(patches, w27,
      scale.reshape(1, Cout).astype(jnp.float32),
      bias.reshape(1, Cout).astype(jnp.float32))
    return out.reshape(B, H, W, Cout)


# ----------------------------------------------------------------------------
# Kernel 3: head = mean over mel bins + Linear(512 -> class_num), class dim
#           padded to 128 lanes for lane-dense stores.
# ----------------------------------------------------------------------------
def _head_kernel(x_ref, g_ref, w_ref, b_ref, o_ref, *, inv_wm):
    # x_ref: (1, Ht*Wm, C) bf16; g_ref: (Ht, Ht*Wm) bf16 (group-sum matrix)
    xm = jnp.dot(g_ref[...], x_ref[0],
                 preferred_element_type=jnp.float32) * inv_wm     # (Ht, C) f32
    y = jnp.dot(xm.astype(jnp.bfloat16), w_ref[...],
                preferred_element_type=jnp.float32) + b_ref[...]  # (Ht, NPAD)
    o_ref[0, :, :] = y


def head(x, wfc, bfc):
    """x: (B, Ht, Wm, C) bf16 -> (B, Ht, class_num) f32."""
    B, Ht, Wm, C = x.shape
    ncls = wfc.shape[-1]
    npad = ((ncls + 127) // 128) * 128

    wp = jnp.zeros((C, npad), jnp.bfloat16).at[:, :ncls].set(
        wfc.astype(jnp.bfloat16))
    bp = jnp.zeros((1, npad), jnp.float32).at[0, :ncls].set(
        bfc.astype(jnp.float32))
    g = np.zeros((Ht, Ht * Wm), np.float32)
    for t in range(Ht):
        g[t, t * Wm:(t + 1) * Wm] = 1.0
    g = jnp.asarray(g, jnp.bfloat16)

    out = pl.pallas_call(
        functools.partial(_head_kernel, inv_wm=1.0 / Wm),
        out_shape=jax.ShapeDtypeStruct((B, Ht, npad), jnp.float32),
        grid_spec=pltpu.PrefetchScalarGridSpec(
            num_scalar_prefetch=0,
            grid=(B,),
            in_specs=[
                pl.BlockSpec((1, Ht * Wm, C), lambda b: (b, 0, 0)),
                pl.BlockSpec((Ht, Ht * Wm), lambda b: (0, 0)),
                pl.BlockSpec((C, npad), lambda b: (0, 0)),
                pl.BlockSpec((1, npad), lambda b: (0, 0)),
            ],
            out_specs=pl.BlockSpec((1, Ht, npad), lambda b: (b, 0, 0)),
        ),
        compiler_params=pltpu.CompilerParams(dimension_semantics=("parallel",)),
    )(x.reshape(B, Ht * Wm, C), g, wp, bp)
    return out[:, :, :ncls]


# ----------------------------------------------------------------------------
# Parameters (deterministic synthetic init) and full forward
# ----------------------------------------------------------------------------
def init_params(key, class_num):
    ks = jax.random.split(key, 7)

    def conv_w(k, cin, cout):
        std = (2.0 / (9 * cin)) ** 0.5
        return std * jax.random.normal(k, (3, 3, cin, cout), jnp.float32)

    params = {
        "w1a": conv_w(ks[0], 3, 128),
        "w1b": conv_w(ks[1], 128, 128),
        "w2a": conv_w(ks[2], 128, 256),
        "w2b": conv_w(ks[3], 256, 256),
        "w3a": conv_w(ks[4], 256, 512),
        "w3b": conv_w(ks[5], 512, 512),
        "wfc": 0.05 * jax.random.normal(ks[6], (512, class_num), jnp.float32),
        "bfc": jnp.zeros((class_num,), jnp.float32),
    }
    eps = 1e-5
    for name, c in [("1a", 128), ("1b", 128), ("2a", 256), ("2b", 256),
                    ("3a", 512), ("3b", 512)]:
        gamma = jnp.ones((c,), jnp.float32)
        beta = jnp.zeros((c,), jnp.float32)
        rmean = jnp.zeros((c,), jnp.float32)
        rvar = jnp.ones((c,), jnp.float32)
        scale = gamma / jnp.sqrt(rvar + eps)
        params[f"s{name}"] = scale
        params[f"b{name}"] = beta - rmean * scale
    return params


def crnn9_forward(params, x_nchw, interp_ratio=8):
    """x_nchw: (batch, mic_channels=3, time_steps, mel_bins), f32."""
    x = jnp.transpose(x_nchw, (0, 2, 3, 1)).astype(jnp.float32)  # NCHW -> NHWC
    _, H, W, _ = x.shape
    assert H % 8 == 0 and W % 8 == 0, "time_steps/mel_bins must be multiples of 8"

    # block 1: conv(3->128) ; conv(128->128)+pool (fused)
    x = conv3x3_first(x, params["w1a"], params["s1a"], params["b1a"])
    x = conv3x3_bn_relu(x, params["w1b"], params["s1b"], params["b1b"], pool=True)
    # block 2: conv(128->256) ; conv(256->256)+pool
    x = conv3x3_bn_relu(x, params["w2a"], params["s2a"], params["b2a"], pool=False)
    x = conv3x3_bn_relu(x, params["w2b"], params["s2b"], params["b2b"], pool=True)
    # block 3: conv(256->512) ; conv(512->512)+pool
    x = conv3x3_bn_relu(x, params["w3a"], params["s3a"], params["b3a"], pool=False)
    x = conv3x3_bn_relu(x, params["w3b"], params["s3b"], params["b3b"], pool=True)

    # x: (B, T/8, M/8, 512) -> mean over mel + FC (fused head kernel)
    out = head(x, params["wfc"], params["bfc"])            # (B, T/8, class_num)
    # interpolate(x, ratio): repeat each timestep `ratio` times (glue)
    return jnp.repeat(out, interp_ratio, axis=1)           # (B, T, class_num)


# ----------------------------------------------------------------------------
# Pure-JAX reference (numerics mirror the bf16/f32 kernel path)
# ----------------------------------------------------------------------------
def reference_forward(params, x_nchw, interp_ratio=8):
    xf = jnp.transpose(x_nchw, (0, 2, 3, 1)).astype(jnp.float32)

    def conv(x, w, s, b):
        y = jax.lax.conv_general_dilated(
            x.astype(jnp.bfloat16), w.astype(jnp.bfloat16), (1, 1), "SAME",
            dimension_numbers=("NHWC", "HWIO", "NHWC"),
            preferred_element_type=jnp.float32,
        )
        return jnp.maximum(y * s + b, 0.0)

    def pool(y):
        yb = y.astype(jnp.bfloat16).astype(jnp.float32)
        B, H, W, C = yb.shape
        return yb.reshape(B, H // 2, 2, W // 2, 2, C).mean(axis=(2, 4))

    def block(x, wa, sa, ba, wb, sb, bb):
        h = conv(x, wa, sa, ba).astype(jnp.bfloat16)
        h = conv(h, wb, sb, bb)
        return pool(h).astype(jnp.bfloat16)

    h = block(xf, params["w1a"], params["s1a"], params["b1a"],
              params["w1b"], params["s1b"], params["b1b"])
    h = block(h, params["w2a"], params["s2a"], params["b2a"],
              params["w2b"], params["s2b"], params["b2b"])
    h = block(h, params["w3a"], params["s3a"], params["b3a"],
              params["w3b"], params["s3b"], params["b3b"])
    xm = h.astype(jnp.float32).mean(axis=2)                 # (B, T/8, 512)
    y = jnp.dot(xm.astype(jnp.bfloat16), params["wfc"].astype(jnp.bfloat16),
                preferred_element_type=jnp.float32) + params["bfc"]
    return jnp.repeat(y, interp_ratio, axis=1)


if __name__ == "__main__":
    class_num = 10
    key = jax.random.PRNGKey(0)
    pkey, k1, k2 = jax.random.split(key, 3)
    params = init_params(pkey, class_num)

    # (batch_size, mic_channels, time_steps, mel_bins); the second case makes
    # block 1 run with more than one spatial tile (exercises the tiled path).
    cases = [((2, 3, 16, 16), k1), ((1, 3, 32, 32), k2)]
    for shape, xkey in cases:
        x = jax.random.normal(xkey, shape, jnp.float32)
        out = jax.block_until_ready(crnn9_forward(params, x))
        assert out.shape == (shape[0], shape[2], class_num), out.shape
        ref = jax.block_until_ready(reference_forward(params, x))
        np.testing.assert_allclose(np.asarray(out), np.asarray(ref),
                                   rtol=2e-2, atol=2e-2)

    print("KERNEL_OK")
</pallas_src>

<mosaic_0001>
module attributes {stable_mosaic.version = 11 : i64} {
  func.func @_conv27_kernel(%arg0: i32, %arg1: i32, %arg2: memref<1x256x27xbf16, #tpu.memory_space<vmem>>, %arg3: memref<27x128xbf16, #tpu.memory_space<vmem>>, %arg4: memref<1x128xf32, #tpu.memory_space<vmem>>, %arg5: memref<1x128xf32, #tpu.memory_space<vmem>>, %arg6: memref<1x256x128xbf16, #tpu.memory_space<vmem>>) attributes {dimension_semantics = [#tpu.dimension_semantics<parallel>, #tpu.dimension_semantics<parallel>], iteration_bounds = array<i64: 2, 1>, scalar_prefetch = 0 : i64, scratch_operands = 0 : i64, tpu.core_type = #tpu.core_type<tc>, window_params = [{transform_indices = @transform_0, window_bounds = array<i64: 1, 256, 27>}, {pipeline_mode = #tpu.pipeline_mode<synchronous>, transform_indices = @transform_1, window_bounds = array<i64: 27, 128>}, {pipeline_mode = #tpu.pipeline_mode<synchronous>, transform_indices = @transform_2, window_bounds = array<i64: 1, 128>}, {pipeline_mode = #tpu.pipeline_mode<synchronous>, transform_indices = @transform_3, window_bounds = array<i64: 1, 128>}, {transform_indices = @transform_4, window_bounds = array<i64: 1, 256, 128>}]} {
    %c0 = arith.constant 0 : index
    %c0_0 = arith.constant 0 : index
    %c0_1 = arith.constant 0 : index
    %0 = vector.load %arg2[%c0, %c0_0, %c0_1] : memref<1x256x27xbf16, #tpu.memory_space<vmem>>, vector<1x256x27xbf16>
    %1 = vector.shape_cast %0 : vector<1x256x27xbf16> to vector<256x27xbf16>
    %c0_2 = arith.constant 0 : index
    %c0_3 = arith.constant 0 : index
    %2 = vector.load %arg3[%c0_2, %c0_3] : memref<27x128xbf16, #tpu.memory_space<vmem>>, vector<27x128xbf16>
    %cst = arith.constant dense<0.000000e+00> : vector<256x128xf32>
    %3 = tpu.matmul %1, %2, %cst {dimension_numbers = #tpu.dot_dimension_numbers<[1], [0], [0], [1], [0, 0, 1, 1], [], []>} : vector<256x27xbf16>, vector<27x128xbf16>, vector<256x128xf32> -> vector<256x128xf32>
    %c0_4 = arith.constant 0 : index
    %c0_5 = arith.constant 0 : index
    %4 = vector.load %arg4[%c0_4, %c0_5] : memref<1x128xf32, #tpu.memory_space<vmem>>, vector<1x128xf32>
    %5 = vector.broadcast %4 : vector<1x128xf32> to vector<256x128xf32>
    %6 = arith.mulf %3, %5 : vector<256x128xf32>
    %c0_6 = arith.constant 0 : index
    %c0_7 = arith.constant 0 : index
    %7 = vector.load %arg5[%c0_6, %c0_7] : memref<1x128xf32, #tpu.memory_space<vmem>>, vector<1x128xf32>
    %8 = vector.broadcast %7 : vector<1x128xf32> to vector<256x128xf32>
    %9 = arith.addf %6, %8 : vector<256x128xf32>
    %cst_8 = arith.constant 0.000000e+00 : f32
    %10 = vector.broadcast %cst_8 : f32 to vector<256x128xf32>
    %11 = arith.maximumf %9, %10 : vector<256x128xf32>
    %12 = arith.truncf %11 : vector<256x128xf32> to vector<256x128xbf16>
    %c0_9 = arith.constant 0 : index
    %c0_10 = arith.constant 0 : index
    %c0_11 = arith.constant 0 : index
    %13 = vector.load %arg6[%c0_9, %c0_10, %c0_11] : memref<1x256x128xbf16, #tpu.memory_space<vmem>>, vector<1x256x128xbf16>
    %14 = vector.shape_cast %13 : vector<1x256x128xbf16> to vector<256x128xbf16>
    %15 = vector.shape_cast %12 : vector<256x128xbf16> to vector<1x256x128xbf16>
    tpu.vector_store %arg6[%c0_9, %c0_10, %c0_11], %15 {strides = array<i32>} : memref<1x256x128xbf16, #tpu.memory_space<vmem>>, vector<1x256x128xbf16>,
    return
  }
  func.func @transform_0(%arg0: i32, %arg1: i32) -> (i32, i32, i32) {
    %c0_i32 = arith.constant 0 : i32
    %c0_i32_0 = arith.constant 0 : i32
    return %arg0, %arg1, %c0_i32 : i32, i32, i32
  }
  func.func @transform_1(%arg0: i32, %arg1: i32) -> (i32, i32) {
    %c0_i32 = arith.constant 0 : i32
    %c0_i32_0 = arith.constant 0 : i32
    %c0_i32_1 = arith.constant 0 : i32
    return %c0_i32, %c0_i32_0 : i32, i32
  }
  func.func @transform_2(%arg0: i32, %arg1: i32) -> (i32, i32) {
    %c0_i32 = arith.constant 0 : i32
    %c0_i32_0 = arith.constant 0 : i32
    %c0_i32_1 = arith.constant 0 : i32
    return %c0_i32, %c0_i32_0 : i32, i32
  }
  func.func @transform_3(%arg0: i32, %arg1: i32) -> (i32, i32) {
    %c0_i32 = arith.constant 0 : i32
    %c0_i32_0 = arith.constant 0 : i32
    %c0_i32_1 = arith.constant 0 : i32
    return %c0_i32, %c0_i32_0 : i32, i32
  }
  func.func @transform_4(%arg0: i32, %arg1: i32) -> (i32, i32, i32) {
    %c0_i32 = arith.constant 0 : i32
    %c0_i32_0 = arith.constant 0 : i32
    return %arg0, %arg1, %c0_i32 : i32, i32, i32
  }
}

</mosaic_0001>

<bundles_post_ra>
// kernel: tpu_custom_call.1
= control target key start
LH: loop header
LB: loop body
LE: loop exit
PB: predicated region body
PF: predicated region fallthrough
CT: control target
= control target key end

     0   :  { %9 = vsyncpa [#allocation3], 0  ;;  %s1392_s0 = inlined_call_operand.vmem [shape: bf16[2,256,27], index: 0, kind: input, shape index: {}]   ;;  %s1393_s1 = inlined_call_operand.vmem [shape: bf16[27,128], index: 1, kind: input, shape index: {}]   ;;  %s1394_s2 = inlined_call_operand.vmem [shape: f32[1,128], index: 2, kind: input, shape index: {}]   ;;  %s1395_s3 = inlined_call_operand.vmem [shape: f32[1,128], index: 3, kind: input, shape index: {}]   ;;  %s1396_s4 = inlined_call_operand.hbm [shape: bf16[2,256,128], index: 4, kind: output, shape index: {}]  }
   0x1   :  { %11 = vsyncpa [#allocation3 + $0x1], 0  ;;  %s1155_s15 = smov 0   ;;  %s1157_s16 = smov 0  }
   0x2   :  { %s1159_s17 = smov 0   ;;  %s1161_s18 = smov 0  }
   0x3   :  { %s1163_s19 = smov 0   ;;  %s1165_s20 = smov 0  }
   0x4 LB: > { %s765_s21 = sadd.s32 4294967295, %s1125_s20   ;;  %s766_s22 = sadd.s32 4294967294, %s1125_s20   ;;  %s1125_s20 = sphi %s1165_s20, %s17_s20   ;;  %s1121_s19 = sphi %s1163_s19, %s1403_s19   ;;  %s1117_s18 = sphi %s1161_s18, %s1402_s18   ;;  %s1113_s17 = sphi %s1159_s17, %s1401_s17   ;;  %s1109_s16 = sphi %s1157_s16, %s1400_s16   ;;  %s1105_s15 = sphi %s1155_s15, %s1399_s15  }
   0x5   : > { %s29_s23 = sadd.s32 1, %s1121_s19  ;;  %s129_s24 = sadd.s32 1, %s1113_s17 }
   0x6   : > { %p31_p0 = scmp.ge.s32.totalorder %s29_s23, 2  ;;  %p139_p1 = scmp.ne.s32.totalorder %s1113_s17, %s1109_s16 }
   0x7   : > { %p140_p2 = scmp.eq.s32.totalorder %s765_s21, 1  ;;  %p145_p3 = scmp.ne.s32.totalorder %s1109_s16, %s1105_s15 }
   0x8   : > { %s1405_s23 = smov (%p31_p0, %s29_s23), 0  ;;  %p146_p5 = scmp.eq.s32.totalorder %s766_s22, 1 }
   0x9   : > { %p1195_p4 = por %p140_p2, %p139_p1  ;;  %s124_s26 = ssub.s32 %s1121_s19, %s1405_s23 }
   0xa   : > { %p769_p6 = scmp.ge.s32.totalorder %s1125_s20, 1  ;;  %p127_p7 = scmp.eq.s32.totalorder %s124_s26, 0 }
   0xb   : > { %p1202_p8 = por %p146_p5, %p145_p3  ;;  %p186_p9 = scmp.lt.s32.totalorder %s1125_s20, 3 }
   0xc   : > { %s1208_s28 = scalar_select %p127_p7, %s1113_s17, %s129_s24  }
   0xd   : > { %p187_p10 = pnand %p769_p6, %p186_p9 }
   0xe   : > { %p217_p11 = scmp.lt.s32.totalorder (!%p187_p10), %s1117_s18, 1  ;;  %s213_s26 = sand.u32 (!%p187_p10), 1, %s1109_s16  }
   0xf   : > { %190 = sbr.rel (%p187_p10) target bundleno = 235 (0xeb), region = 36  ;;  %s770_s29 = sshll.u32 (!%p187_p10), %s213_s26, 7 }
  0x10   : > { %s1285_s30 = scalar_lea.vmem (!%p187_p10), [#allocation2], %s770_s29  ;;  %s885_s5 = sshll.u32 (!%p187_p10), %s1117_s18, 7 }
  0x11   : > { %s669_s10 = scalar_lea.sflag (!%p187_p10), [#allocation3], %s213_s26  ;;  %s1067_s21 = scalar_lea.hbm (!%p187_p10), %s1396_s4, 256 }
  0x14   : > { %v843_v0 = vld [vmem:[%s1393_s1 + $0x8] sm:$0xf]  ;;  %v884_v1 = vld [vmem:[%s1393_s1 + $0x8] sm:$0x30]  ;;  %vm404_vm0 = vcmask 1044480   ;;  %vm405_vm1 = vcmask 1045504  }
  0x15   : > { %v844_v2 = vor.u32 %v884_v1, %v843_v0  ;;  %v1127_v3 = vmov 65535   ;;  %s218_s7 = scalar_select %p217_p11, %s1117_s18, 1  ;;  %v883_v7 = vld [vmem:[%s1393_s1] sm:$0xff]  ;;  %vm355_vm2 = vcmask 220160  }
  0x16   : > { %v406_v4 = vsel %vm404_vm0, 4294967295, %v1127_v3  ;;  %v1261_v26 = vld [vmem:[%s1394_s2] ss:$0 sm:$0xff]  ;;  %s683_s18 = sshll.u32 %s1285_s30, 4  ;;  %s684_s18 = int_to_ptr.vmem [resolvable:$true] %s683_s18 }
  0x17   : > { %v407_v5 = vsel %vm405_vm1, %v406_v4, 0  ;;  %s866_s8 = sshll.u32 %s218_s7, 7  ;;  %v1267_v28 = vld [vmem:[%s1395_s3] ss:$0 sm:$0xff] }
  0x18   : > { %v409_v6 = vand.u32 %v844_v2, %v407_v5  ;;  %s1224_s13 = scalar_lea.vmem %s1392_s0, %s866_s8  ;;  %s682_s8 = scalar_lea.hbm %s1396_s4, %s885_s5 }
  0x19   : > { %v867_v8 = vld [vmem:[%s1224_s13] sm:$0xff]  ;;  %v868_v12 = vld [vmem:[%s1224_s13 + $0x8] sm:$0xff]  ;;  %v869_v16 = vld [vmem:[%s1224_s13 + $0x10] sm:$0xff]  ;;  %s685_s9 = sshll.u32 %s682_s8, 4  ;;  %s686_s9 = int_to_ptr.hbm [resolvable:$true] %s685_s9 }
  0x1a   : > { %417 = vmatpush.bf16.msra.mxu0 %v409_v6  ;;  %981 = vmatpush.bf16.msra.mxu1 %v409_v6  ;;  %v871_v9 = vld [vmem:[%s1224_s13 + $0x20] sm:$0xff]  ;;  %v872_v13 = vld [vmem:[%s1224_s13 + $0x28] sm:$0xff]  ;;  %v873_v17 = vld [vmem:[%s1224_s13 + $0x30] sm:$0xff]  ;;  %s1061_s11 = sshra.s32 %s686_s9, 4  ;;  %s1062_s11 = int_to_ptr.hbm [resolvable:$true] %s1061_s11 }
  0x1b   : > { %982 = vmatpush.bf16.msra.mxu2 %v409_v6  ;;  %983 = vmatpush.bf16.msra.mxu3 %v409_v6  ;;  %v875_v10 = vld [vmem:[%s1224_s13 + $0x40] sm:$0xff]  ;;  %v876_v14 = vld [vmem:[%s1224_s13 + $0x48] sm:$0xff]  ;;  %v877_v18 = vld [vmem:[%s1224_s13 + $0x50] sm:$0xff]  ;;  %s1063_s12 = scalar_lea.hbm %s1062_s11, 128  ;;  %p1068_p1 = scmp.lt.s32.totalorder %s1062_s11, %s1396_s4 }
  0x1c   : > { %v879_v11 = vld [vmem:[%s1224_s13 + $0x60] sm:$0xff]  ;;  %v880_v15 = vld [vmem:[%s1224_s13 + $0x68] sm:$0xff]  ;;  %v881_v19 = vld [vmem:[%s1224_s13 + $0x70] sm:$0xff]  ;;  %p1064_p12 = scmp.ne.s32.totalorder %s1062_s11, %s1063_s12  ;;  %p1069_p2 = scmp.lt.s32.totalorder %s1067_s21, %s1063_s12 }
  0x1d   : > { %v870_v20 = vld [vmem:[%s1224_s13 + $0x18] sm:$0xff] }
  0x1e   : > { %418 = vmatpush.bf16.msra.mxu0 %v883_v7  ;;  %984 = vmatpush.bf16.msra.mxu1 %v883_v7  ;;  %v874_v21 = vld [vmem:[%s1224_s13 + $0x38] sm:$0xff]  ;;  %p1065_p13 = pnand %p1064_p12, %p1195_p4  ;;  %p1070_p3 = por %p1069_p2, %p1068_p1 }
  0x1f   : > { %985 = vmatpush.bf16.msra.mxu2 %v883_v7  ;;  %986 = vmatpush.bf16.msra.mxu3 %v883_v7  ;;  %v878_v22 = vld [vmem:[%s1224_s13 + $0x58] sm:$0xff] }
  0x20   : > { %v882_v23 = vld [vmem:[%s1224_s13 + $0x78] sm:$0xff]  ;;  %p1066_p0 = pneg %p1065_p13 }
  0x21   : > { %845 = vmatmul.msk.bf16.vlgmr.msra.gmra.mxu0 %vm355_vm2, %v867_v8  ;;  %849 = vmatmul.msk.bf16.vlgmr.msra.gmra.mxu1 %vm355_vm2, %v871_v9 }
  0x22   : > { %853 = vmatmul.msk.bf16.vlgmr.msra.gmra.mxu2 %vm355_vm2, %v875_v10  ;;  %857 = vmatmul.msk.bf16.vlgmr.msra.gmra.mxu3 %vm355_vm2, %v879_v11  ;;  %p1071_p5 = pnand %p1070_p3, %p1066_p0 }
  0x31   : > { %846 = vmatmul.msk.bf16.gmra.mxu0 %vm355_vm2, %v868_v12  ;;  %850 = vmatmul.msk.bf16.gmra.mxu1 %vm355_vm2, %v872_v13 }
  0x32   : > { %854 = vmatmul.msk.bf16.gmra.mxu2 %vm355_vm2, %v876_v14  ;;  %858 = vmatmul.msk.bf16.gmra.mxu3 %vm355_vm2, %v880_v15 }
  0x41   : > { %847 = vmatmul.msk.bf16.gmra.mxu0 %vm355_vm2, %v869_v16  ;;  %851 = vmatmul.msk.bf16.gmra.mxu1 %vm355_vm2, %v873_v17 }
  0x42   : > { %855 = vmatmul.msk.bf16.gmra.mxu2 %vm355_vm2, %v877_v18  ;;  %859 = vmatmul.msk.bf16.gmra.mxu3 %vm355_vm2, %v881_v19 }
  0x51   : > { %848 = vmatmul.msk.bf16.gmra.mxu0 %vm355_vm2, %v870_v20  ;;  %852 = vmatmul.msk.bf16.gmra.mxu1 %vm355_vm2, %v874_v21 }
  0x52   : > { %856 = vmatmul.msk.bf16.gmra.mxu2 %vm355_vm2, %v878_v22  ;;  %860 = vmatmul.msk.bf16.gmra.mxu3 %vm355_vm2, %v882_v23 }
  0x9e   : > { %v420_v24 = vpop.f32.mrf.mxu0  ;;  %v440_v25 = vpop.f32.mrf.mxu1 }
  0x9f   : > { %v504_v27 = vmul.f32 %v1261_v26, %v420_v24  ;;  %v512_v29 = vmul.f32 %v1261_v26, %v440_v25 }
  0xa1   : > { %v540_v34 = vadd.f32 %v1267_v28, %v504_v27  ;;  %v548_v35 = vadd.f32 %v1267_v28, %v512_v29 }
  0xa3   : > { %v572_v42 = vmax.f32 %v540_v34, 0.0  ;;  %v580_v43 = vmax.f32 %v548_v35, 0.0 }
  0xa5   : > { %v460_v30 = vpop.f32.mrf.mxu2  ;;  %v480_v31 = vpop.f32.mrf.mxu3 }
  0xa6   : > { %v422_v32 = vpop.f32.mrf.mxu0  ;;  %v442_v33 = vpop.f32.mrf.mxu1  ;;  %v520_v40 = vmul.f32 %v1261_v26, %v460_v30  ;;  %v528_v41 = vmul.f32 %v1261_v26, %v480_v31 }
  0xa7   : > { %v505_v36 = vmul.f32 %v1261_v26, %v422_v32  ;;  %v513_v37 = vmul.f32 %v1261_v26, %v442_v33 }
  0xa8   : > { %v556_v50 = vadd.f32 %v1267_v28, %v520_v40  ;;  %v564_v51 = vadd.f32 %v1267_v28, %v528_v41 }
  0xa9   : > { %v541_v38 = vadd.f32 %v1267_v28, %v505_v36  ;;  %v549_v39 = vadd.f32 %v1267_v28, %v513_v37 }
  0xaa   : > { %v588_v58 = vmax.f32 %v556_v50, 0.0  ;;  %v596_v59 = vmax.f32 %v564_v51, 0.0 }
  0xab   : > { %v573_v44 = vmax.f32 %v541_v38, 0.0  ;;  %v581_v45 = vmax.f32 %v549_v39, 0.0 }
  0xad   : > { %v889_v46 = vpack.c.bf16 %v573_v44, %v572_v42  ;;  %v909_v47 = vpack.c.bf16 %v581_v45, %v580_v43  ;;  %v462_v48 = vpop.f32.mrf.mxu2  ;;  %v482_v49 = vpop.f32.mrf.mxu3 }
  0xae   : > { %v521_v52 = vmul.f32 %v1261_v26, %v462_v48  ;;  %v529_v53 = vmul.f32 %v1261_v26, %v482_v49  ;;  %v425_v54 = vpop.f32.mrf.mxu0  ;;  %v445_v55 = vpop.f32.mrf.mxu1 }
  0xaf   : > { %890 = vst [vmem:[%s1285_s30] sm:$0xff] %v889_v46   ;;  %v506_v62 = vmul.f32 %v1261_v26, %v425_v54  ;;  %v514_v63 = vmul.f32 %v1261_v26, %v445_v55 }
  0xb0   : > { %969 = vst [vmem:[%s1285_s30 + $0x20] sm:$0xff] %v909_v47   ;;  %v557_v56 = vadd.f32 %v1267_v28, %v521_v52  ;;  %v565_v57 = vadd.f32 %v1267_v28, %v529_v53 }
  0xb1   : > { %v542_v6 = vadd.f32 %v1267_v28, %v506_v62  ;;  %v550_v7 = vadd.f32 %v1267_v28, %v514_v63 }
  0xb2   : > { %v589_v60 = vmax.f32 %v557_v56, 0.0  ;;  %v597_v61 = vmax.f32 %v565_v57, 0.0 }
  0xb3   : > { %v574_v14 = vmax.f32 %v542_v6, 0.0  ;;  %v582_v15 = vmax.f32 %v550_v7, 0.0 }
  0xb4   : > { %v929_v0 = vpack.c.bf16 %v589_v60, %v588_v58  ;;  %v949_v1 = vpack.c.bf16 %v597_v61, %v596_v59 }
  0xb5   : > { %v465_v2 = vpop.f32.mrf.mxu2  ;;  %v485_v3 = vpop.f32.mrf.mxu3 }
  0xb6   : > { %973 = vst [vmem:[%s1285_s30 + $0x40] sm:$0xff] %v929_v0   ;;  %v427_v4 = vpop.f32.mrf.mxu0  ;;  %v447_v5 = vpop.f32.mrf.mxu1  ;;  %v522_v12 = vmul.f32 %v1261_v26, %v465_v2  ;;  %v530_v13 = vmul.f32 %v1261_v26, %v485_v3 }
  0xb7   : > { %977 = vst [vmem:[%s1285_s30 + $0x60] sm:$0xff] %v949_v1   ;;  %v507_v8 = vmul.f32 %v1261_v26, %v427_v4  ;;  %v515_v9 = vmul.f32 %v1261_v26, %v447_v5 }
  0xb8   : > { %v558_v22 = vadd.f32 %v1267_v28, %v522_v12  ;;  %v566_v23 = vadd.f32 %v1267_v28, %v530_v13 }
  0xb9   : > { %v543_v10 = vadd.f32 %v1267_v28, %v507_v8  ;;  %v551_v11 = vadd.f32 %v1267_v28, %v515_v9 }
  0xba   : > { %v590_v32 = vmax.f32 %v558_v22, 0.0  ;;  %v598_v33 = vmax.f32 %v566_v23, 0.0 }
  0xbb   : > { %v575_v16 = vmax.f32 %v543_v10, 0.0  ;;  %v583_v17 = vmax.f32 %v551_v11, 0.0 }
  0xbd   : > { %v894_v18 = vpack.c.bf16 %v575_v16, %v574_v14  ;;  %v914_v19 = vpack.c.bf16 %v583_v17, %v582_v15  ;;  %v467_v20 = vpop.f32.mrf.mxu2  ;;  %v487_v21 = vpop.f32.mrf.mxu3 }
  0xbe   : > { %v523_v24 = vmul.f32 %v1261_v26, %v467_v20  ;;  %v531_v25 = vmul.f32 %v1261_v26, %v487_v21  ;;  %v430_v27 = vpop.f32.mrf.mxu0  ;;  %v450_v29 = vpop.f32.mrf.mxu1 }
  0xbf   : > { %966 = vst [vmem:[%s1285_s30 + $0x8] sm:$0xff] %v894_v18   ;;  %v508_v36 = vmul.f32 %v1261_v26, %v430_v27  ;;  %v516_v37 = vmul.f32 %v1261_v26, %v450_v29 }
  0xc0   : > { %970 = vst [vmem:[%s1285_s30 + $0x28] sm:$0xff] %v914_v19   ;;  %v559_v30 = vadd.f32 %v1267_v28, %v523_v24  ;;  %v567_v31 = vadd.f32 %v1267_v28, %v531_v25 }
  0xc1   : > { %v544_v44 = vadd.f32 %v1267_v28, %v508_v36  ;;  %v552_v45 = vadd.f32 %v1267_v28, %v516_v37 }
  0xc2   : > { %v591_v34 = vmax.f32 %v559_v30, 0.0  ;;  %v599_v35 = vmax.f32 %v567_v31, 0.0 }
  0xc3   : > { %v576_v52 = vmax.f32 %v544_v44, 0.0  ;;  %v584_v53 = vmax.f32 %v552_v45, 0.0 }
  0xc4   : > { %v934_v38 = vpack.c.bf16 %v591_v34, %v590_v32  ;;  %v954_v39 = vpack.c.bf16 %v599_v35, %v598_v33 }
  0xc5   : > { %v470_v40 = vpop.f32.mrf.mxu2  ;;  %v490_v41 = vpop.f32.mrf.mxu3 }
  0xc6   : > { %974 = vst [vmem:[%s1285_s30 + $0x48] sm:$0xff] %v934_v38   ;;  %v432_v42 = vpop.f32.mrf.mxu0  ;;  %v452_v43 = vpop.f32.mrf.mxu1  ;;  %v524_v50 = vmul.f32 %v1261_v26, %v470_v40  ;;  %v532_v51 = vmul.f32 %v1261_v26, %v490_v41 }
  0xc7   : > { %978 = vst [vmem:[%s1285_s30 + $0x68] sm:$0xff] %v954_v39   ;;  %v509_v46 = vmul.f32 %v1261_v26, %v432_v42  ;;  %v517_v47 = vmul.f32 %v1261_v26, %v452_v43 }
  0xc8   : > { %v560_v60 = vadd.f32 %v1267_v28, %v524_v50  ;;  %v568_v61 = vadd.f32 %v1267_v28, %v532_v51 }
  0xc9   : > { %v545_v48 = vadd.f32 %v1267_v28, %v509_v46  ;;  %v553_v49 = vadd.f32 %v1267_v28, %v517_v47 }
  0xca   : > { %v592_v4 = vmax.f32 %v560_v60, 0.0  ;;  %v600_v5 = vmax.f32 %v568_v61, 0.0 }
  0xcb   : > { %v577_v54 = vmax.f32 %v545_v48, 0.0  ;;  %v585_v55 = vmax.f32 %v553_v49, 0.0 }
  0xcd   : > { %v899_v56 = vpack.c.bf16 %v577_v54, %v576_v52  ;;  %v919_v57 = vpack.c.bf16 %v585_v55, %v584_v53  ;;  %v472_v58 = vpop.f32.mrf.mxu2  ;;  %v492_v59 = vpop.f32.mrf.mxu3 }
  0xce   : > { %v525_v62 = vmul.f32 %v1261_v26, %v472_v58  ;;  %v533_v63 = vmul.f32 %v1261_v26, %v492_v59  ;;  %v435_v0 = vpop.f32.mrf.mxu0  ;;  %v455_v1 = vpop.f32.mrf.mxu1 }
  0xcf   : > { %967 = vst [vmem:[%s1285_s30 + $0x10] sm:$0xff] %v899_v56   ;;  %v510_v8 = vmul.f32 %v1261_v26, %v435_v0  ;;  %v518_v9 = vmul.f32 %v1261_v26, %v455_v1 }
  0xd0   : > { %971 = vst [vmem:[%s1285_s30 + $0x30] sm:$0xff] %v919_v57   ;;  %v561_v2 = vadd.f32 %v1267_v28, %v525_v62  ;;  %v569_v3 = vadd.f32 %v1267_v28, %v533_v63 }
  0xd1   : > { %v546_v16 = vadd.f32 %v1267_v28, %v510_v8  ;;  %v554_v17 = vadd.f32 %v1267_v28, %v518_v9 }
  0xd2   : > { %v593_v6 = vmax.f32 %v561_v2, 0.0  ;;  %v601_v7 = vmax.f32 %v569_v3, 0.0 }
  0xd3   : > { %v578_v24 = vmax.f32 %v546_v16, 0.0  ;;  %v586_v25 = vmax.f32 %v554_v17, 0.0 }
  0xd4   : > { %v939_v10 = vpack.c.bf16 %v593_v6, %v592_v4  ;;  %v959_v11 = vpack.c.bf16 %v601_v7, %v600_v5 }
  0xd5   : > { %v475_v12 = vpop.f32.mrf.mxu2  ;;  %v495_v13 = vpop.f32.mrf.mxu3 }
  0xd6   : > { %975 = vst [vmem:[%s1285_s30 + $0x50] sm:$0xff] %v939_v10   ;;  %v437_v14 = vpop.f32.mrf.mxu0  ;;  %v457_v15 = vpop.f32.mrf.mxu1  ;;  %v526_v22 = vmul.f32 %v1261_v26, %v475_v12  ;;  %v534_v23 = vmul.f32 %v1261_v26, %v495_v13 }
  0xd7   : > { %979 = vst [vmem:[%s1285_s30 + $0x70] sm:$0xff] %v959_v11   ;;  %v511_v18 = vmul.f32 %v1261_v26, %v437_v14  ;;  %v519_v19 = vmul.f32 %v1261_v26, %v457_v15 }
  0xd8   : > { %v562_v34 = vadd.f32 %v1267_v28, %v526_v22  ;;  %v570_v35 = vadd.f32 %v1267_v28, %v534_v23 }
  0xd9   : > { %v547_v20 = vadd.f32 %v1267_v28, %v511_v18  ;;  %v555_v21 = vadd.f32 %v1267_v28, %v519_v19 }
  0xda   : > { %v594_v40 = vmax.f32 %v562_v34, 0.0  ;;  %v602_v41 = vmax.f32 %v570_v35, 0.0 }
  0xdb   : > { %v579_v27 = vmax.f32 %v547_v20, 0.0  ;;  %v587_v29 = vmax.f32 %v555_v21, 0.0 }
  0xdd   : > { %v904_v30 = vpack.c.bf16 %v579_v27, %v578_v24  ;;  %v924_v31 = vpack.c.bf16 %v587_v29, %v586_v25  ;;  %v477_v32 = vpop.f32.mrf.mxu2  ;;  %v497_v33 = vpop.f32.mrf.mxu3 }
  0xde   : > { %v527_v36 = vmul.f32 %v1261_v26, %v477_v32  ;;  %v535_v37 = vmul.f32 %v1261_v26, %v497_v33 }
  0xdf   : > { %968 = vst [vmem:[%s1285_s30 + $0x18] sm:$0xff] %v904_v30  }
  0xe0   : > { %972 = vst [vmem:[%s1285_s30 + $0x38] sm:$0xff] %v924_v31   ;;  %v563_v38 = vadd.f32 %v1267_v28, %v527_v36  ;;  %v571_v39 = vadd.f32 %v1267_v28, %v535_v37 }
  0xe2   : > { %v595_v42 = vmax.f32 %v563_v38, 0.0  ;;  %v603_v26 = vmax.f32 %v571_v39, 0.0 }
  0xe4   : > { %v944_v43 = vpack.c.bf16 %v595_v42, %v594_v40  ;;  %v964_v44 = vpack.c.bf16 %v603_v26, %v602_v41 }
  0xe6   : > { %976 = vst [vmem:[%s1285_s30 + $0x58] sm:$0xff] %v944_v43  }
  0xe7   : > { %980 = vst [vmem:[%s1285_s30 + $0x78] sm:$0xff] %v964_v44  }
  0xe8   : > { %1074 = shalt.err (!%p1071_p5)
}
  0xe9   : > { %s1128_s26 = smov 64   ;;  %s1129_s29 = smov 4  }
  0xea   : > { %987 = dma.vmem_to_hbm [thread:$0]  (%p1195_p4), %s684_s18, 2048, %s686_s9, %s669_s10, %s1128_s26, %s1128_s26, %s1129_s29  }
  0xeb PF: > { %p993_p6 = scmp.ge.s32.totalorder %s1125_s20, 2  ;;  %s700_s30 = sand.u32 1, %s1105_s15  }
  0xec   : > { %s701_s5 = scalar_lea.sflag [#allocation3], %s700_s30 }
  0xed   : > { %p990_p7 = pnand %p993_p6, %p1202_p8 }
  0xef   : > { %p991_p9 = pneg %p990_p7 }
  0xf1   : > { %1100 = dma.done.wait (%p991_p9), %s701_s5, 2048  }
  0xf2   : > { %1102 = vsyncadd (%p991_p9), %s701_s5, 4294965248  ;;  %s17_s20 = sadd.s32 1, %s1125_s20   ;;  %s1399_s15 = smov %s1109_s16 }
  0xf3   : > { %p14_p10 = scmp.ge.s32.totalorder %s17_s20, 4   ;;  %s1400_s16 = smov %s1113_s17 }
  0xf4   : > { %s1401_s17 = smov %s1208_s28  ;;  %s1402_s18 = smov %s1121_s19 }
  0xf5   : > { %s1403_s19 = smov %s1405_s23  ;;  %16 = sbr.rel (!%p14_p10) target bundleno = 4 (0x4), region = 71 }
  0xfa   :  { %707 = vsyncpa [#allocation3], 1 }
  0xfb   :  { %709 = vsyncpa [#allocation3 + $0x1], 1 }

</bundles_post_ra>
